<compile_context>
chip_gen: v5e
topology: v5e:2x2
jax: 0.10.0
libtpu: 0.0.40
codegen_flags: <defaults>
</compile_context>

<pallas_src>
import jax
import jax.numpy as jnp
import numpy as np
from jax import lax
from jax.experimental import pallas as pl
from jax.experimental.pallas import tpu as pltpu

LANE = 128


def _round_up(n, m):
    return ((n + m - 1) // m) * m


# --------------------------------- kernel ------------------------------------

def _make_kernel(BB, L, EP, FP, NCP, compute_dtype):
    """BB: batch block, L: seq len, EP/FP/NCP: lane-padded embed/filters/classes."""
    H0 = L - 2

    def kernel(x_ref, wr_ref, br_ref, wc_ref, bc_ref, wl_ref, bl_ref,
               out_ref, act_ref, pool_ref, px_ref):
        # Weights stay resident across the grid (constant index maps).
        wr0, wr1, wr2 = wr_ref[0], wr_ref[1], wr_ref[2]      # [EP, FP] bf16
        wc0, wc1, wc2 = wc_ref[0], wc_ref[1], wc_ref[2]      # [FP, FP] bf16
        br = br_ref[...]                                     # [1, FP] f32
        bc = bc_ref[...]                                     # [1, FP] f32

        def boundary_masks(h):
            """Masks marking each sample's first / last row in the flattened
            [BB*h, FP] block (built without integer div/mod)."""
            n = BB * h
            idx = lax.broadcasted_iota(jnp.int32, (n, FP), 0)
            first = idx == 0
            last = idx == (h - 1)
            for b in range(1, BB):
                first = jnp.logical_or(first, idx == b * h)
                last = jnp.logical_or(last, idx == (b * h + h - 1))
            return first, last

        def stage(z, h):
            """ReLU the conv output and stage it (rows [1, n]) in act_ref so the
            next conv can read +/-1 shifted taps; returns the centre tap value."""
            r = jnp.maximum(z, 0.0)
            if h > 1:
                act_ref[pl.ds(1, BB * h), :] = r
            return r

        def conv_block(mid, h, first_m, last_m):
            """3x1 conv with per-sample zero padding (top/bottom), batch folded
            into the matmul M dimension.  `mid` is the relu'd centre tap value;
            shifted taps come from act_ref and are boundary-masked (no zero-row
            stores)."""
            n = BB * h
            z = jnp.dot(mid.astype(compute_dtype), wc1,
                        preferred_element_type=jnp.float32)
            if h > 1:
                top = jnp.where(first_m, 0.0, act_ref[pl.ds(0, n), :])
                bot = jnp.where(last_m, 0.0, act_ref[pl.ds(2, n), :])
                z = z + jnp.dot(top.astype(compute_dtype), wc0,
                                preferred_element_type=jnp.float32)
                z = z + jnp.dot(bot.astype(compute_dtype), wc2,
                                preferred_element_type=jnp.float32)
            return z + bc

        def max_pool(z, h):
            """padding2 (one zero row at the bottom of every sample) followed by
            MaxPool2d((3,1), stride=2) over the flattened [BB*h, FP] block."""
            n = BB * h
            ho = (h - 2) // 2 + 1
            no = BB * ho
            pool_ref[pl.ds(0, n), :] = z
            if h % 2 == 0:
                # Uniform mapping: output row i reads input rows 2i, 2i+1, 2i+2.
                w0 = pool_ref[pl.ds(0, no, 2), :]
                w1 = pool_ref[pl.ds(1, no, 2), :]
                w2 = pool_ref[pl.ds(2, no, 2), :]
                # The last window of every sample reads one row past the sample:
                # that position is the zero pad row, not the neighbour sample.
                idx = lax.broadcasted_iota(jnp.int32, (no, FP), 0)
                last_w = idx == (ho - 1)
                for b in range(1, BB):
                    last_w = jnp.logical_or(last_w, idx == (b * ho + ho - 1))
                w2 = jnp.where(last_w, 0.0, w2)
                px = jnp.maximum(jnp.maximum(w0, w1), w2)
            else:
                # Odd h: no window ever touches the pad row, but the row mapping
                # is offset by the sample index, so the strided loads stay
                # per-sample.
                if BB == 1:
                    w0 = pool_ref[pl.ds(0, ho, 2), :]
                    w1 = pool_ref[pl.ds(1, ho, 2), :]
                    w2 = pool_ref[pl.ds(2, ho, 2), :]
                    px = jnp.maximum(jnp.maximum(w0, w1), w2)
                else:
                    for b in range(BB):
                        base = b * h
                        w0 = pool_ref[pl.ds(base + 0, ho, 2), :]
                        w1 = pool_ref[pl.ds(base + 1, ho, 2), :]
                        w2 = pool_ref[pl.ds(base + 2, ho, 2), :]
                        px_ref[pl.ds(b * ho, ho), :] = jnp.maximum(
                            jnp.maximum(w0, w1), w2)
                    px = px_ref[pl.ds(0, no), :]
            return px, ho

        # -------- conv_region: 3-tap conv over the raw embeddings (no pad) ----
        H = H0
        for b in range(BB):
            xb = x_ref[b]                                          # [L, EP] f32
            zb = (jnp.dot(xb[0:H].astype(compute_dtype), wr0,
                          preferred_element_type=jnp.float32)
                  + jnp.dot(xb[1:H + 1].astype(compute_dtype), wr1,
                            preferred_element_type=jnp.float32)
                  + jnp.dot(xb[2:H + 2].astype(compute_dtype), wr2,
                            preferred_element_type=jnp.float32)
                  + br)
            # Stage relu(conv_region) straight into the next conv's input rows.
            act_ref[pl.ds(1 + b * H, H), :] = jnp.maximum(zb, 0.0)

        first_m, last_m = boundary_masks(H) if H > 1 else (None, None)
        mid = act_ref[pl.ds(1, BB * H), :]
        z = conv_block(mid, H, first_m, last_m)          # conv #1
        mid = stage(z, H)
        z = conv_block(mid, H, first_m, last_m)          # conv #2

        # while x.size(2) > 2: _block(x)   (heights are static -> unrolled)
        while H > 2:
            px, H = max_pool(z, H)
            first_m, last_m = boundary_masks(H) if H > 1 else (None, None)
            mid = stage(px, H)
            y = conv_block(mid, H, first_m, last_m)
            mid = stage(y, H)
            y = conv_block(mid, H, first_m, last_m)
            z = y + px

        # Here H == 1, so z is [BB, FP] (the squeezed features); linear head.
        logits = jnp.dot(z.astype(compute_dtype), wl_ref[...],
                         preferred_element_type=jnp.float32) + bl_ref[...]
        out_ref[0, :, :] = logits                        # lane-dense store

    return kernel


# -------------------------------- wrapper ------------------------------------

def dpcnn_forward(x_emb, params, *, compute_dtype=jnp.bfloat16):
    B, L, E = x_emb.shape
    F, NC = params["wl"].shape

    EP = _round_up(E, LANE)
    FP = _round_up(F, LANE)
    NCP = _round_up(NC, LANE)
    H0 = L - 2

    # Same implicit constraint as the PyTorch module (squeeze + Linear):
    # the pooling loop must terminate at height 1.
    h = H0
    while h > 2:
        h = (h - 2) // 2 + 1
    assert h == 1, "sequence length incompatible with the DPCNN head"

    # Batch blocking: keep M = BB*H reasonable for the MXU, but give the
    # (parallel) grid at least 2 steps so a v7x megacore can shard it.
    BB = min(B, 16)
    G = -(-B // BB)
    if G == 1 and B > 1:
        G = 2
    BB = -(-B // G)
    Bpad = G * BB

    def pad2(a, r, c):
        return jnp.pad(a, ((0, r - a.shape[0]), (0, c - a.shape[1])))

    # Per-tap weight matrices, lane-padded, cast to bf16 for the MXU.
    wr = jnp.stack([pad2(params[f"wr{t}"], EP, FP) for t in range(3)]
                   ).astype(compute_dtype)                      # [3, EP, FP]
    wc = jnp.stack([pad2(params[f"wc{t}"], FP, FP) for t in range(3)]
                   ).astype(compute_dtype)                      # [3, FP, FP]
    wl = pad2(params["wl"], FP, NCP).astype(compute_dtype)      # [FP, NCP]
    br = pad2(params["br"], 1, FP).astype(jnp.float32)
    bc = pad2(params["bc"], 1, FP).astype(jnp.float32)
    bl = pad2(params["bl"], 1, NCP).astype(jnp.float32)

    x = jnp.pad(x_emb.astype(jnp.float32),
                ((0, Bpad - B), (0, 0), (0, EP - E)))           # [Bpad, L, EP]

    max_ho = (H0 - 2) // 2 + 1 if H0 > 2 else 1
    act_rows = BB * H0 + 2

    kernel = _make_kernel(BB, L, EP, FP, NCP, compute_dtype)

    # Explicit VMEM budget (double-buffered blocks + resident scratch).
    def nbytes(shape, dt):
        return int(np.prod(shape)) * jnp.dtype(dt).itemsize

    vmem_need = (
        2 * nbytes((BB, L, EP), jnp.float32)                    # input block
        + 2 * nbytes((1, BB, NCP), jnp.float32)                 # output block
        + 2 * (nbytes((3, EP, FP), compute_dtype)
               + nbytes((3, FP, FP), compute_dtype)
               + nbytes((FP, NCP), compute_dtype)
               + 2 * nbytes((1, FP), jnp.float32)
               + nbytes((1, NCP), jnp.float32))                 # weights/biases
        + 2 * nbytes((act_rows, FP), jnp.float32)               # act + pool
        + nbytes((max(1, BB * max_ho), FP), jnp.float32))       # pooled feats
    vmem_limit = int(min(max(int(vmem_need * 1.5) + (8 << 20), 32 << 20),
                         100 << 20))

    out = pl.pallas_call(
        kernel,
        out_shape=jax.ShapeDtypeStruct((G, BB, NCP), jnp.float32),
        grid_spec=pltpu.PrefetchScalarGridSpec(
            num_scalar_prefetch=0,
            grid=(G,),
            in_specs=[
                pl.BlockSpec((BB, L, EP), lambda g: (g, 0, 0)),   # embeddings
                pl.BlockSpec((3, EP, FP), lambda g: (0, 0, 0)),   # conv_region W
                pl.BlockSpec((1, FP), lambda g: (0, 0)),          # conv_region b
                pl.BlockSpec((3, FP, FP), lambda g: (0, 0, 0)),   # conv W
                pl.BlockSpec((1, FP), lambda g: (0, 0)),          # conv b
                pl.BlockSpec((FP, NCP), lambda g: (0, 0)),        # linear W
                pl.BlockSpec((1, NCP), lambda g: (0, 0)),         # linear b
            ],
            out_specs=pl.BlockSpec((1, BB, NCP), lambda g: (g, 0, 0)),
            scratch_shapes=[
                pltpu.VMEM((act_rows, FP), jnp.float32),          # staged relu
                pltpu.VMEM((act_rows, FP), jnp.float32),          # pool workspace
                pltpu.VMEM((max(1, BB * max_ho), FP), jnp.float32),  # odd-h pool
            ],
        ),
        compiler_params=pltpu.CompilerParams(
            dimension_semantics=("parallel",),
            vmem_limit_bytes=vmem_limit),
    )(x, wr, br, wc, bc, wl, bl)

    return out.reshape(Bpad, NCP)[:B, :NC]        # strip batch / lane padding


# ----------------------------- pure-JAX reference -----------------------------

def ref_forward(x_emb, p):
    def conv3(x, w0, w1, w2, b):
        h = x.shape[1]
        return x[:, 0:h - 2] @ w0 + x[:, 1:h - 1] @ w1 + x[:, 2:h] @ w2 + b

    def pad(x, t, bo):
        return jnp.pad(x, ((0, 0), (t, bo), (0, 0)))

    def maxpool(x):
        h = x.shape[1]
        ho = (h - 3) // 2 + 1
        return jnp.stack([x[:, 2 * j:2 * j + 3].max(axis=1) for j in range(ho)],
                         axis=1)

    x = conv3(x_emb, p["wr0"], p["wr1"], p["wr2"], p["br"])
    x = jnp.maximum(pad(x, 1, 1), 0.0)
    x = conv3(x, p["wc0"], p["wc1"], p["wc2"], p["bc"])
    x = jnp.maximum(pad(x, 1, 1), 0.0)
    x = conv3(x, p["wc0"], p["wc1"], p["wc2"], p["bc"])
    while x.shape[1] > 2:
        px = maxpool(pad(x, 0, 1))
        y = jnp.maximum(pad(px, 1, 1), 0.0)
        y = conv3(y, p["wc0"], p["wc1"], p["wc2"], p["bc"])
        y = jnp.maximum(pad(y, 1, 1), 0.0)
        y = conv3(y, p["wc0"], p["wc1"], p["wc2"], p["bc"])
        x = y + px
    return x[:, 0, :] @ p["wl"] + p["bl"]


# ---------------------------------- main --------------------------------------

if __name__ == "__main__":
    # Small shapes consistent with the module: batch=2, seq_len=8,
    # vocab=100, embed=32, num_filters=16, num_classes=10.
    B, L = 2, 8
    VOCAB, E, F, NC = 100, 32, 16, 10

    key = jax.random.PRNGKey(0)
    ks = jax.random.split(key, 8)

    emb_table = jax.random.normal(ks[0], (VOCAB, E), jnp.float32)
    input_ids = jax.random.randint(ks[1], (B, L), 0, VOCAB)

    s_r = 1.0 / np.sqrt(3 * E)    # conv_region fan-in = 1*3*embed
    s_c = 1.0 / np.sqrt(3 * F)    # conv        fan-in = nf*3*1
    s_l = 1.0 / np.sqrt(F)        # linear      fan-in = nf

    wr = jax.random.normal(ks[2], (3, E, F), jnp.float32) * s_r   # per-tap [E, F]
    wc = jax.random.normal(ks[3], (3, F, F), jnp.float32) * s_c   # per-tap [F, F]
    wl = jax.random.normal(ks[4], (F, NC), jnp.float32) * s_l     # [F, NC]

    params = dict(
        wr0=wr[0], wr1=wr[1], wr2=wr[2],
        br=jax.random.normal(ks[5], (1, F), jnp.float32) * s_r,
        wc0=wc[0], wc1=wc[1], wc2=wc[2],
        bc=jax.random.normal(ks[6], (1, F), jnp.float32) * s_c,
        wl=wl,
        bl=jax.random.normal(ks[7], (1, NC), jnp.float32) * s_l,
    )

    # Embedding lookup (gather) kept in plain JAX as glue.
    x_emb = emb_table[input_ids]                  # [B, L, E]

    out = jax.block_until_ready(dpcnn_forward(x_emb, params))
    ref = ref_forward(x_emb, params)

    assert out.shape == (B, NC)
    # Tolerance reflects bfloat16 MXU inputs (f32 accumulation) vs f32 reference.
    np.testing.assert_allclose(np.asarray(out), np.asarray(ref),
                               rtol=5e-2, atol=5e-2)
    print("KERNEL_OK")
</pallas_src>

<mosaic_0001>
module attributes {stable_mosaic.version = 11 : i64} {
  func.func @kernel(%arg0: i32, %arg1: memref<1x8x128xf32, #tpu.memory_space<vmem>>, %arg2: memref<3x128x128xbf16, #tpu.memory_space<vmem>>, %arg3: memref<1x128xf32, #tpu.memory_space<vmem>>, %arg4: memref<3x128x128xbf16, #tpu.memory_space<vmem>>, %arg5: memref<1x128xf32, #tpu.memory_space<vmem>>, %arg6: memref<128x128xbf16, #tpu.memory_space<vmem>>, %arg7: memref<1x128xf32, #tpu.memory_space<vmem>>, %arg8: memref<1x1x128xf32, #tpu.memory_space<vmem>>, %arg9: memref<8x128xf32, #tpu.memory_space<vmem>>, %arg10: memref<8x128xf32, #tpu.memory_space<vmem>>, %arg11: memref<3x128xf32, #tpu.memory_space<vmem>>) attributes {dimension_semantics = [#tpu.dimension_semantics<parallel>], iteration_bounds = array<i64: 2>, scalar_prefetch = 0 : i64, scratch_operands = 3 : i64, tpu.core_type = #tpu.core_type<tc>, window_params = [{transform_indices = @transform_0, window_bounds = array<i64: 1, 8, 128>}, {pipeline_mode = #tpu.pipeline_mode<synchronous>, transform_indices = @transform_1, window_bounds = array<i64: 3, 128, 128>}, {pipeline_mode = #tpu.pipeline_mode<synchronous>, transform_indices = @transform_2, window_bounds = array<i64: 1, 128>}, {pipeline_mode = #tpu.pipeline_mode<synchronous>, transform_indices = @transform_3, window_bounds = array<i64: 3, 128, 128>}, {pipeline_mode = #tpu.pipeline_mode<synchronous>, transform_indices = @transform_4, window_bounds = array<i64: 1, 128>}, {pipeline_mode = #tpu.pipeline_mode<synchronous>, transform_indices = @transform_5, window_bounds = array<i64: 128, 128>}, {pipeline_mode = #tpu.pipeline_mode<synchronous>, transform_indices = @transform_6, window_bounds = array<i64: 1, 128>}, {transform_indices = @transform_7, window_bounds = array<i64: 1, 1, 128>}]} {
    %c0 = arith.constant 0 : index
    %c0_0 = arith.constant 0 : index
    %c0_1 = arith.constant 0 : index
    %0 = vector.load %arg2[%c0, %c0_0, %c0_1] : memref<3x128x128xbf16, #tpu.memory_space<vmem>>, vector<1x128x128xbf16>
    %1 = vector.shape_cast %0 : vector<1x128x128xbf16> to vector<128x128xbf16>
    %c1 = arith.constant 1 : index
    %c0_2 = arith.constant 0 : index
    %c0_3 = arith.constant 0 : index
    %2 = vector.load %arg2[%c1, %c0_2, %c0_3] : memref<3x128x128xbf16, #tpu.memory_space<vmem>>, vector<1x128x128xbf16>
    %3 = vector.shape_cast %2 : vector<1x128x128xbf16> to vector<128x128xbf16>
    %c2 = arith.constant 2 : index
    %c0_4 = arith.constant 0 : index
    %c0_5 = arith.constant 0 : index
    %4 = vector.load %arg2[%c2, %c0_4, %c0_5] : memref<3x128x128xbf16, #tpu.memory_space<vmem>>, vector<1x128x128xbf16>
    %5 = vector.shape_cast %4 : vector<1x128x128xbf16> to vector<128x128xbf16>
    %c0_6 = arith.constant 0 : index
    %c0_7 = arith.constant 0 : index
    %c0_8 = arith.constant 0 : index
    %6 = vector.load %arg4[%c0_6, %c0_7, %c0_8] : memref<3x128x128xbf16, #tpu.memory_space<vmem>>, vector<1x128x128xbf16>
    %7 = vector.shape_cast %6 : vector<1x128x128xbf16> to vector<128x128xbf16>
    %c1_9 = arith.constant 1 : index
    %c0_10 = arith.constant 0 : index
    %c0_11 = arith.constant 0 : index
    %8 = vector.load %arg4[%c1_9, %c0_10, %c0_11] : memref<3x128x128xbf16, #tpu.memory_space<vmem>>, vector<1x128x128xbf16>
    %9 = vector.shape_cast %8 : vector<1x128x128xbf16> to vector<128x128xbf16>
    %c2_12 = arith.constant 2 : index
    %c0_13 = arith.constant 0 : index
    %c0_14 = arith.constant 0 : index
    %10 = vector.load %arg4[%c2_12, %c0_13, %c0_14] : memref<3x128x128xbf16, #tpu.memory_space<vmem>>, vector<1x128x128xbf16>
    %11 = vector.shape_cast %10 : vector<1x128x128xbf16> to vector<128x128xbf16>
    %c0_15 = arith.constant 0 : index
    %c0_16 = arith.constant 0 : index
    %12 = vector.load %arg3[%c0_15, %c0_16] : memref<1x128xf32, #tpu.memory_space<vmem>>, vector<1x128xf32>
    %c0_17 = arith.constant 0 : index
    %c0_18 = arith.constant 0 : index
    %13 = vector.load %arg5[%c0_17, %c0_18] : memref<1x128xf32, #tpu.memory_space<vmem>>, vector<1x128xf32>
    %c0_19 = arith.constant 0 : index
    %c0_20 = arith.constant 0 : index
    %c0_21 = arith.constant 0 : index
    %14 = vector.load %arg1[%c0_19, %c0_20, %c0_21] : memref<1x8x128xf32, #tpu.memory_space<vmem>>, vector<1x8x128xf32>
    %15 = vector.shape_cast %14 : vector<1x8x128xf32> to vector<8x128xf32>
    %16 = vector.extract_strided_slice %15 {offsets = [0, 0], sizes = [6, 128], strides = [1, 1]} : vector<8x128xf32> to vector<6x128xf32>
    %17 = arith.truncf %16 : vector<6x128xf32> to vector<6x128xbf16>
    %cst = arith.constant dense<0.000000e+00> : vector<6x128xf32>
    %18 = tpu.matmul %17, %1, %cst {dimension_numbers = #tpu.dot_dimension_numbers<[1], [0], [0], [1], [0, 0, 1, 1], [], []>} : vector<6x128xbf16>, vector<128x128xbf16>, vector<6x128xf32> -> vector<6x128xf32>
    %19 = vector.extract_strided_slice %15 {offsets = [1, 0], sizes = [6, 128], strides = [1, 1]} : vector<8x128xf32> to vector<6x128xf32>
    %20 = arith.truncf %19 : vector<6x128xf32> to vector<6x128xbf16>
    %cst_22 = arith.constant dense<0.000000e+00> : vector<6x128xf32>
    %21 = tpu.matmul %20, %3, %cst_22 {dimension_numbers = #tpu.dot_dimension_numbers<[1], [0], [0], [1], [0, 0, 1, 1], [], []>} : vector<6x128xbf16>, vector<128x128xbf16>, vector<6x128xf32> -> vector<6x128xf32>
    %22 = arith.addf %18, %21 : vector<6x128xf32>
    %23 = vector.extract_strided_slice %15 {offsets = [2, 0], sizes = [6, 128], strides = [1, 1]} : vector<8x128xf32> to vector<6x128xf32>
    %24 = arith.truncf %23 : vector<6x128xf32> to vector<6x128xbf16>
    %cst_23 = arith.constant dense<0.000000e+00> : vector<6x128xf32>
    %25 = tpu.matmul %24, %5, %cst_23 {dimension_numbers = #tpu.dot_dimension_numbers<[1], [0], [0], [1], [0, 0, 1, 1], [], []>} : vector<6x128xbf16>, vector<128x128xbf16>, vector<6x128xf32> -> vector<6x128xf32>
    %26 = arith.addf %22, %25 : vector<6x128xf32>
    %27 = vector.broadcast %12 : vector<1x128xf32> to vector<6x128xf32>
    %28 = arith.addf %26, %27 : vector<6x128xf32>
    %cst_24 = arith.constant 0.000000e+00 : f32
    %29 = vector.broadcast %cst_24 : f32 to vector<6x128xf32>
    %30 = arith.maximumf %28, %29 : vector<6x128xf32>
    %c1_25 = arith.constant 1 : index
    %c0_26 = arith.constant 0 : index
    %31 = vector.load %arg9[%c1_25, %c0_26] : memref<8x128xf32, #tpu.memory_space<vmem>>, vector<6x128xf32>
    tpu.vector_store %arg9[%c1_25, %c0_26], %30 {strides = array<i32>} : memref<8x128xf32, #tpu.memory_space<vmem>>, vector<6x128xf32>,
    %32 = tpu.iota {dimensions = array<i32: 0>} : vector<6x128xi32>
    %c0_i32 = arith.constant 0 : i32
    %33 = vector.broadcast %c0_i32 : i32 to vector<6x128xi32>
    %34 = arith.cmpi eq, %32, %33 : vector<6x128xi32>
    %c5_i32 = arith.constant 5 : i32
    %35 = vector.broadcast %c5_i32 : i32 to vector<6x128xi32>
    %36 = arith.cmpi eq, %32, %35 : vector<6x128xi32>
    %c1_27 = arith.constant 1 : index
    %c0_28 = arith.constant 0 : index
    %37 = vector.load %arg9[%c1_27, %c0_28] : memref<8x128xf32, #tpu.memory_space<vmem>>, vector<6x128xf32>
    %38 = arith.truncf %37 : vector<6x128xf32> to vector<6x128xbf16>
    %cst_29 = arith.constant dense<0.000000e+00> : vector<6x128xf32>
    %39 = tpu.matmul %38, %9, %cst_29 {dimension_numbers = #tpu.dot_dimension_numbers<[1], [0], [0], [1], [0, 0, 1, 1], [], []>} : vector<6x128xbf16>, vector<128x128xbf16>, vector<6x128xf32> -> vector<6x128xf32>
    %c0_30 = arith.constant 0 : index
    %c0_31 = arith.constant 0 : index
    %40 = vector.load %arg9[%c0_30, %c0_31] : memref<8x128xf32, #tpu.memory_space<vmem>>, vector<6x128xf32>
    %cst_32 = arith.constant 0.000000e+00 : f32
    %41 = vector.broadcast %cst_32 : f32 to vector<6x128xf32>
    %42 = arith.select %34, %41, %40 : vector<6x128xi1>, vector<6x128xf32>
    %c2_33 = arith.constant 2 : index
    %c0_34 = arith.constant 0 : index
    %43 = vector.load %arg9[%c2_33, %c0_34] : memref<8x128xf32, #tpu.memory_space<vmem>>, vector<6x128xf32>
    %cst_35 = arith.constant 0.000000e+00 : f32
    %44 = vector.broadcast %cst_35 : f32 to vector<6x128xf32>
    %45 = arith.select %36, %44, %43 : vector<6x128xi1>, vector<6x128xf32>
    %46 = arith.truncf %42 : vector<6x128xf32> to vector<6x128xbf16>
    %cst_36 = arith.constant dense<0.000000e+00> : vector<6x128xf32>
    %47 = tpu.matmul %46, %7, %cst_36 {dimension_numbers = #tpu.dot_dimension_numbers<[1], [0], [0], [1], [0, 0, 1, 1], [], []>} : vector<6x128xbf16>, vector<128x128xbf16>, vector<6x128xf32> -> vector<6x128xf32>
    %48 = arith.addf %39, %47 : vector<6x128xf32>
    %49 = arith.truncf %45 : vector<6x128xf32> to vector<6x128xbf16>
    %cst_37 = arith.constant dense<0.000000e+00> : vector<6x128xf32>
    %50 = tpu.matmul %49, %11, %cst_37 {dimension_numbers = #tpu.dot_dimension_numbers<[1], [0], [0], [1], [0, 0, 1, 1], [], []>} : vector<6x128xbf16>, vector<128x128xbf16>, vector<6x128xf32> -> vector<6x128xf32>
    %51 = arith.addf %48, %50 : vector<6x128xf32>
    %52 = vector.broadcast %13 : vector<1x128xf32> to vector<6x128xf32>
    %53 = arith.addf %51, %52 : vector<6x128xf32>
    %cst_38 = arith.constant 0.000000e+00 : f32
    %54 = vector.broadcast %cst_38 : f32 to vector<6x128xf32>
    %55 = arith.maximumf %53, %54 : vector<6x128xf32>
    %c1_39 = arith.constant 1 : index
    %c0_40 = arith.constant 0 : index
    %56 = vector.load %arg9[%c1_39, %c0_40] : memref<8x128xf32, #tpu.memory_space<vmem>>, vector<6x128xf32>
    tpu.vector_store %arg9[%c1_39, %c0_40], %55 {strides = array<i32>} : memref<8x128xf32, #tpu.memory_space<vmem>>, vector<6x128xf32>,
    %57 = arith.truncf %55 : vector<6x128xf32> to vector<6x128xbf16>
    %cst_41 = arith.constant dense<0.000000e+00> : vector<6x128xf32>
    %58 = tpu.matmul %57, %9, %cst_41 {dimension_numbers = #tpu.dot_dimension_numbers<[1], [0], [0], [1], [0, 0, 1, 1], [], []>} : vector<6x128xbf16>, vector<128x128xbf16>, vector<6x128xf32> -> vector<6x128xf32>
    %c0_42 = arith.constant 0 : index
    %c0_43 = arith.constant 0 : index
    %59 = vector.load %arg9[%c0_42, %c0_43] : memref<8x128xf32, #tpu.memory_space<vmem>>, vector<6x128xf32>
    %cst_44 = arith.constant 0.000000e+00 : f32
    %60 = vector.broadcast %cst_44 : f32 to vector<6x128xf32>
    %61 = arith.select %34, %60, %59 : vector<6x128xi1>, vector<6x128xf32>
    %c2_45 = arith.constant 2 : index
    %c0_46 = arith.constant 0 : index
    %62 = vector.load %arg9[%c2_45, %c0_46] : memref<8x128xf32, #tpu.memory_space<vmem>>, vector<6x128xf32>
    %cst_47 = arith.constant 0.000000e+00 : f32
    %63 = vector.broadcast %cst_47 : f32 to vector<6x128xf32>
    %64 = arith.select %36, %63, %62 : vector<6x128xi1>, vector<6x128xf32>
    %65 = arith.truncf %61 : vector<6x128xf32> to vector<6x128xbf16>
    %cst_48 = arith.constant dense<0.000000e+00> : vector<6x128xf32>
    %66 = tpu.matmul %65, %7, %cst_48 {dimension_numbers = #tpu.dot_dimension_numbers<[1], [0], [0], [1], [0, 0, 1, 1], [], []>} : vector<6x128xbf16>, vector<128x128xbf16>, vector<6x128xf32> -> vector<6x128xf32>
    %67 = arith.addf %58, %66 : vector<6x128xf32>
    %68 = arith.truncf %64 : vector<6x128xf32> to vector<6x128xbf16>
    %cst_49 = arith.constant dense<0.000000e+00> : vector<6x128xf32>
    %69 = tpu.matmul %68, %11, %cst_49 {dimension_numbers = #tpu.dot_dimension_numbers<[1], [0], [0], [1], [0, 0, 1, 1], [], []>} : vector<6x128xbf16>, vector<128x128xbf16>, vector<6x128xf32> -> vector<6x128xf32>
    %70 = arith.addf %67, %69 : vector<6x128xf32>
    %71 = vector.broadcast %13 : vector<1x128xf32> to vector<6x128xf32>
    %72 = arith.addf %70, %71 : vector<6x128xf32>
    %c0_50 = arith.constant 0 : index
    %c0_51 = arith.constant 0 : index
    %73 = vector.load %arg10[%c0_50, %c0_51] : memref<8x128xf32, #tpu.memory_space<vmem>>, vector<6x128xf32>
    tpu.vector_store %arg10[%c0_50, %c0_51], %72 {strides = array<i32>} : memref<8x128xf32, #tpu.memory_space<vmem>>, vector<6x128xf32>,
    %c0_52 = arith.constant 0 : index
    %c0_53 = arith.constant 0 : index
    %74 = tpu.strided_load %arg10[%c0_52, %c0_53] {strides = array<i32: 2, 1>} : memref<8x128xf32, #tpu.memory_space<vmem>>, vector<3x128xf32>
    %c1_54 = arith.constant 1 : index
    %c0_55 = arith.constant 0 : index
    %75 = tpu.strided_load %arg10[%c1_54, %c0_55] {strides = array<i32: 2, 1>} : memref<8x128xf32, #tpu.memory_space<vmem>>, vector<3x128xf32>
    %c2_56 = arith.constant 2 : index
    %c0_57 = arith.constant 0 : index
    %76 = tpu.strided_load %arg10[%c2_56, %c0_57] {strides = array<i32: 2, 1>} : memref<8x128xf32, #tpu.memory_space<vmem>>, vector<3x128xf32>
    %77 = tpu.iota {dimensions = array<i32: 0>} : vector<3x128xi32>
    %c2_i32 = arith.constant 2 : i32
    %78 = vector.broadcast %c2_i32 : i32 to vector<3x128xi32>
    %79 = arith.cmpi eq, %77, %78 : vector<3x128xi32>
    %cst_58 = arith.constant 0.000000e+00 : f32
    %80 = vector.broadcast %cst_58 : f32 to vector<3x128xf32>
    %81 = arith.select %79, %80, %76 : vector<3x128xi1>, vector<3x128xf32>
    %82 = arith.maximumf %74, %75 : vector<3x128xf32>
    %83 = arith.maximumf %82, %81 : vector<3x128xf32>
    %84 = tpu.iota {dimensions = array<i32: 0>} : vector<3x128xi32>
    %c0_i32_59 = arith.constant 0 : i32
    %85 = vector.broadcast %c0_i32_59 : i32 to vector<3x128xi32>
    %86 = arith.cmpi eq, %84, %85 : vector<3x128xi32>
    %c2_i32_60 = arith.constant 2 : i32
    %87 = vector.broadcast %c2_i32_60 : i32 to vector<3x128xi32>
    %88 = arith.cmpi eq, %84, %87 : vector<3x128xi32>
    %cst_61 = arith.constant 0.000000e+00 : f32
    %89 = vector.broadcast %cst_61 : f32 to vector<3x128xf32>
    %90 = arith.maximumf %83, %89 : vector<3x128xf32>
    %c1_62 = arith.constant 1 : index
    %c0_63 = arith.constant 0 : index
    %91 = vector.load %arg9[%c1_62, %c0_63] : memref<8x128xf32, #tpu.memory_space<vmem>>, vector<3x128xf32>
    tpu.vector_store %arg9[%c1_62, %c0_63], %90 {strides = array<i32>} : memref<8x128xf32, #tpu.memory_space<vmem>>, vector<3x128xf32>,
    %92 = arith.truncf %90 : vector<3x128xf32> to vector<3x128xbf16>
    %cst_64 = arith.constant dense<0.000000e+00> : vector<3x128xf32>
    %93 = tpu.matmul %92, %9, %cst_64 {dimension_numbers = #tpu.dot_dimension_numbers<[1], [0], [0], [1], [0, 0, 1, 1], [], []>} : vector<3x128xbf16>, vector<128x128xbf16>, vector<3x128xf32> -> vector<3x128xf32>
    %c0_65 = arith.constant 0 : index
    %c0_66 = arith.constant 0 : index
    %94 = vector.load %arg9[%c0_65, %c0_66] : memref<8x128xf32, #tpu.memory_space<vmem>>, vector<3x128xf32>
    %cst_67 = arith.constant 0.000000e+00 : f32
    %95 = vector.broadcast %cst_67 : f32 to vector<3x128xf32>
    %96 = arith.select %86, %95, %94 : vector<3x128xi1>, vector<3x128xf32>
    %c2_68 = arith.constant 2 : index
    %c0_69 = arith.constant 0 : index
    %97 = vector.load %arg9[%c2_68, %c0_69] : memref<8x128xf32, #tpu.memory_space<vmem>>, vector<3x128xf32>
    %cst_70 = arith.constant 0.000000e+00 : f32
    %98 = vector.broadcast %cst_70 : f32 to vector<3x128xf32>
    %99 = arith.select %88, %98, %97 : vector<3x128xi1>, vector<3x128xf32>
    %100 = arith.truncf %96 : vector<3x128xf32> to vector<3x128xbf16>
    %cst_71 = arith.constant dense<0.000000e+00> : vector<3x128xf32>
    %101 = tpu.matmul %100, %7, %cst_71 {dimension_numbers = #tpu.dot_dimension_numbers<[1], [0], [0], [1], [0, 0, 1, 1], [], []>} : vector<3x128xbf16>, vector<128x128xbf16>, vector<3x128xf32> -> vector<3x128xf32>
    %102 = arith.addf %93, %101 : vector<3x128xf32>
    %103 = arith.truncf %99 : vector<3x128xf32> to vector<3x128xbf16>
    %cst_72 = arith.constant dense<0.000000e+00> : vector<3x128xf32>
    %104 = tpu.matmul %103, %11, %cst_72 {dimension_numbers = #tpu.dot_dimension_numbers<[1], [0], [0], [1], [0, 0, 1, 1], [], []>} : vector<3x128xbf16>, vector<128x128xbf16>, vector<3x128xf32> -> vector<3x128xf32>
    %105 = arith.addf %102, %104 : vector<3x128xf32>
    %106 = vector.broadcast %13 : vector<1x128xf32> to vector<3x128xf32>
    %107 = arith.addf %105, %106 : vector<3x128xf32>
    %cst_73 = arith.constant 0.000000e+00 : f32
    %108 = vector.broadcast %cst_73 : f32 to vector<3x128xf32>
    %109 = arith.maximumf %107, %108 : vector<3x128xf32>
    %c1_74 = arith.constant 1 : index
    %c0_75 = arith.constant 0 : index
    %110 = vector.load %arg9[%c1_74, %c0_75] : memref<8x128xf32, #tpu.memory_space<vmem>>, vector<3x128xf32>
    tpu.vector_store %arg9[%c1_74, %c0_75], %109 {strides = array<i32>} : memref<8x128xf32, #tpu.memory_space<vmem>>, vector<3x128xf32>,
    %111 = arith.truncf %109 : vector<3x128xf32> to vector<3x128xbf16>
    %cst_76 = arith.constant dense<0.000000e+00> : vector<3x128xf32>
    %112 = tpu.matmul %111, %9, %cst_76 {dimension_numbers = #tpu.dot_dimension_numbers<[1], [0], [0], [1], [0, 0, 1, 1], [], []>} : vector<3x128xbf16>, vector<128x128xbf16>, vector<3x128xf32> -> vector<3x128xf32>
    %c0_77 = arith.constant 0 : index
    %c0_78 = arith.constant 0 : index
    %113 = vector.load %arg9[%c0_77, %c0_78] : memref<8x128xf32, #tpu.memory_space<vmem>>, vector<3x128xf32>
    %cst_79 = arith.constant 0.000000e+00 : f32
    %114 = vector.broadcast %cst_79 : f32 to vector<3x128xf32>
    %115 = arith.select %86, %114, %113 : vector<3x128xi1>, vector<3x128xf32>
    %c2_80 = arith.constant 2 : index
    %c0_81 = arith.constant 0 : index
    %116 = vector.load %arg9[%c2_80, %c0_81] : memref<8x128xf32, #tpu.memory_space<vmem>>, vector<3x128xf32>
    %cst_82 = arith.constant 0.000000e+00 : f32
    %117 = vector.broadcast %cst_82 : f32 to vector<3x128xf32>
    %118 = arith.select %88, %117, %116 : vector<3x128xi1>, vector<3x128xf32>
    %119 = arith.truncf %115 : vector<3x128xf32> to vector<3x128xbf16>
    %cst_83 = arith.constant dense<0.000000e+00> : vector<3x128xf32>
    %120 = tpu.matmul %119, %7, %cst_83 {dimension_numbers = #tpu.dot_dimension_numbers<[1], [0], [0], [1], [0, 0, 1, 1], [], []>} : vector<3x128xbf16>, vector<128x128xbf16>, vector<3x128xf32> -> vector<3x128xf32>
    %121 = arith.addf %112, %120 : vector<3x128xf32>
    %122 = arith.truncf %118 : vector<3x128xf32> to vector<3x128xbf16>
    %cst_84 = arith.constant dense<0.000000e+00> : vector<3x128xf32>
    %123 = tpu.matmul %122, %11, %cst_84 {dimension_numbers = #tpu.dot_dimension_numbers<[1], [0], [0], [1], [0, 0, 1, 1], [], []>} : vector<3x128xbf16>, vector<128x128xbf16>, vector<3x128xf32> -> vector<3x128xf32>
    %124 = arith.addf %121, %123 : vector<3x128xf32>
    %125 = vector.broadcast %13 : vector<1x128xf32> to vector<3x128xf32>
    %126 = arith.addf %124, %125 : vector<3x128xf32>
    %127 = arith.addf %126, %83 : vector<3x128xf32>
    %c0_85 = arith.constant 0 : index
    %c0_86 = arith.constant 0 : index
    %128 = vector.load %arg10[%c0_85, %c0_86] : memref<8x128xf32, #tpu.memory_space<vmem>>, vector<3x128xf32>
    tpu.vector_store %arg10[%c0_85, %c0_86], %127 {strides = array<i32>} : memref<8x128xf32, #tpu.memory_space<vmem>>, vector<3x128xf32>,
    %c0_87 = arith.constant 0 : index
    %c0_88 = arith.constant 0 : index
    %129 = tpu.strided_load %arg10[%c0_87, %c0_88] {strides = array<i32: 2, 1>} : memref<8x128xf32, #tpu.memory_space<vmem>>, vector<1x128xf32>
    %c1_89 = arith.constant 1 : index
    %c0_90 = arith.constant 0 : index
    %130 = tpu.strided_load %arg10[%c1_89, %c0_90] {strides = array<i32: 2, 1>} : memref<8x128xf32, #tpu.memory_space<vmem>>, vector<1x128xf32>
    %c2_91 = arith.constant 2 : index
    %c0_92 = arith.constant 0 : index
    %131 = tpu.strided_load %arg10[%c2_91, %c0_92] {strides = array<i32: 2, 1>} : memref<8x128xf32, #tpu.memory_space<vmem>>, vector<1x128xf32>
    %132 = arith.maximumf %129, %130 : vector<1x128xf32>
    %133 = arith.maximumf %132, %131 : vector<1x128xf32>
    %cst_93 = arith.constant 0.000000e+00 : f32
    %134 = vector.broadcast %cst_93 : f32 to vector<1x128xf32>
    %135 = arith.maximumf %133, %134 : vector<1x128xf32>
    %136 = arith.truncf %135 : vector<1x128xf32> to vector<1x128xbf16>
    %cst_94 = arith.constant dense<0.000000e+00> : vector<1x128xf32>
    %137 = tpu.matmul %136, %9, %cst_94 {dimension_numbers = #tpu.dot_dimension_numbers<[1], [0], [0], [1], [0, 0, 1, 1], [], []>} : vector<1x128xbf16>, vector<128x128xbf16>, vector<1x128xf32> -> vector<1x128xf32>
    %138 = arith.addf %137, %13 : vector<1x128xf32>
    %cst_95 = arith.constant 0.000000e+00 : f32
    %139 = vector.broadcast %cst_95 : f32 to vector<1x128xf32>
    %140 = arith.maximumf %138, %139 : vector<1x128xf32>
    %141 = arith.truncf %140 : vector<1x128xf32> to vector<1x128xbf16>
    %cst_96 = arith.constant dense<0.000000e+00> : vector<1x128xf32>
    %142 = tpu.matmul %141, %9, %cst_96 {dimension_numbers = #tpu.dot_dimension_numbers<[1], [0], [0], [1], [0, 0, 1, 1], [], []>} : vector<1x128xbf16>, vector<128x128xbf16>, vector<1x128xf32> -> vector<1x128xf32>
    %143 = arith.addf %142, %13 : vector<1x128xf32>
    %144 = arith.addf %143, %133 : vector<1x128xf32>
    %145 = arith.truncf %144 : vector<1x128xf32> to vector<1x128xbf16>
    %c0_97 = arith.constant 0 : index
    %c0_98 = arith.constant 0 : index
    %146 = vector.load %arg6[%c0_97, %c0_98] : memref<128x128xbf16, #tpu.memory_space<vmem>>, vector<128x128xbf16>
    %cst_99 = arith.constant dense<0.000000e+00> : vector<1x128xf32>
    %147 = tpu.matmul %145, %146, %cst_99 {dimension_numbers = #tpu.dot_dimension_numbers<[1], [0], [0], [1], [0, 0, 1, 1], [], []>} : vector<1x128xbf16>, vector<128x128xbf16>, vector<1x128xf32> -> vector<1x128xf32>
    %c0_100 = arith.constant 0 : index
    %c0_101 = arith.constant 0 : index
    %148 = vector.load %arg7[%c0_100, %c0_101] : memref<1x128xf32, #tpu.memory_space<vmem>>, vector<1x128xf32>
    %149 = arith.addf %147, %148 : vector<1x128xf32>
    %c0_102 = arith.constant 0 : index
    %c0_103 = arith.constant 0 : index
    %c0_104 = arith.constant 0 : index
    %150 = vector.load %arg8[%c0_102, %c0_103, %c0_104] : memref<1x1x128xf32, #tpu.memory_space<vmem>>, vector<1x1x128xf32>
    %151 = vector.shape_cast %150 : vector<1x1x128xf32> to vector<1x128xf32>
    %152 = vector.shape_cast %149 : vector<1x128xf32> to vector<1x1x128xf32>
    tpu.vector_store %arg8[%c0_102, %c0_103, %c0_104], %152 {strides = array<i32>} : memref<1x1x128xf32, #tpu.memory_space<vmem>>, vector<1x1x128xf32>,
    return
  }
  func.func @transform_0(%arg0: i32) -> (i32, i32, i32) {
    %c0_i32 = arith.constant 0 : i32
    %c0_i32_0 = arith.constant 0 : i32
    %c0_i32_1 = arith.constant 0 : i32
    return %arg0, %c0_i32, %c0_i32_0 : i32, i32, i32
  }
  func.func @transform_1(%arg0: i32) -> (i32, i32, i32) {
    %c0_i32 = arith.constant 0 : i32
    %c0_i32_0 = arith.constant 0 : i32
    %c0_i32_1 = arith.constant 0 : i32
    %c0_i32_2 = arith.constant 0 : i32
    return %c0_i32, %c0_i32_0, %c0_i32_1 : i32, i32, i32
  }
  func.func @transform_2(%arg0: i32) -> (i32, i32) {
    %c0_i32 = arith.constant 0 : i32
    %c0_i32_0 = arith.constant 0 : i32
    %c0_i32_1 = arith.constant 0 : i32
    return %c0_i32, %c0_i32_0 : i32, i32
  }
  func.func @transform_3(%arg0: i32) -> (i32, i32, i32) {
    %c0_i32 = arith.constant 0 : i32
    %c0_i32_0 = arith.constant 0 : i32
    %c0_i32_1 = arith.constant 0 : i32
    %c0_i32_2 = arith.constant 0 : i32
    return %c0_i32, %c0_i32_0, %c0_i32_1 : i32, i32, i32
  }
  func.func @transform_4(%arg0: i32) -> (i32, i32) {
    %c0_i32 = arith.constant 0 : i32
    %c0_i32_0 = arith.constant 0 : i32
    %c0_i32_1 = arith.constant 0 : i32
    return %c0_i32, %c0_i32_0 : i32, i32
  }
  func.func @transform_5(%arg0: i32) -> (i32, i32) {
    %c0_i32 = arith.constant 0 : i32
    %c0_i32_0 = arith.constant 0 : i32
    %c0_i32_1 = arith.constant 0 : i32
    return %c0_i32, %c0_i32_0 : i32, i32
  }
  func.func @transform_6(%arg0: i32) -> (i32, i32) {
    %c0_i32 = arith.constant 0 : i32
    %c0_i32_0 = arith.constant 0 : i32
    %c0_i32_1 = arith.constant 0 : i32
    return %c0_i32, %c0_i32_0 : i32, i32
  }
  func.func @transform_7(%arg0: i32) -> (i32, i32, i32) {
    %c0_i32 = arith.constant 0 : i32
    %c0_i32_0 = arith.constant 0 : i32
    %c0_i32_1 = arith.constant 0 : i32
    return %arg0, %c0_i32, %c0_i32_0 : i32, i32, i32
  }
}

</mosaic_0001>

<bundles_post_ra>
// kernel: tpu_custom_call.1
= control target key start
LH: loop header
LB: loop body
LE: loop exit
PB: predicated region body
PF: predicated region fallthrough
CT: control target
= control target key end

     0   :  { %s2276_s0 = inlined_call_operand.hbm [shape: f32[2,8,128], index: 0, kind: input, shape index: {}]   ;;  %s2277_s1 = inlined_call_operand.hbm [shape: bf16[3,128,128], index: 1, kind: input, shape index: {}]   ;;  %s2278_s2 = inlined_call_operand.vmem [shape: f32[1,128], index: 2, kind: input, shape index: {}]   ;;  %s2279_s3 = inlined_call_operand.hbm [shape: bf16[3,128,128], index: 3, kind: input, shape index: {}]   ;;  %s2280_s4 = inlined_call_operand.vmem [shape: f32[1,128], index: 4, kind: input, shape index: {}]   ;;  %s2281_s5 = inlined_call_operand.hbm [shape: bf16[128,128], index: 5, kind: input, shape index: {}]   ;;  %s2282_s6 = inlined_call_operand.vmem [shape: f32[1,128], index: 6, kind: input, shape index: {}]   ;;  %s2283_s7 = inlined_call_operand.hbm [shape: f32[2,1,128], index: 7, kind: output, shape index: {}]  }
   0x1   :  { %2284 = sst [smem:[#allocation18_spill]] %s2277_s1 }
   0x2   :  { %12 = vsyncpa [#allocation6], 0 }
   0x3   :  { %14 = vsyncpa [#allocation6 + $0x1], 0 }
   0x4   :  { %15 = vsyncpa [#allocation9], 0 }
   0x5   :  { %16 = vsyncpa [#allocation12], 0 }
   0x6   :  { %17 = vsyncpa [#allocation7], 0 }
   0x7   :  { %19 = vsyncpa [#allocation7 + $0x1], 0  ;;  %s1896_s24 = smov 0   ;;  %s1898_s25 = smov 0  }
   0x8   :  { %s1900_s26 = smov 0   ;;  %s1902_s27 = smov 0  }
   0x9 LB: > { %s2285_s1 = sld [smem:[#allocation18_spill]]  ;;  %s1920_s8 = sadd.s32 4294967295, %s1849_s27   ;;  %s1849_s27 = sphi %s1902_s27, %s2302_s27   ;;  %s1845_s26 = sphi %s1900_s26, %s2301_s26   ;;  %s1841_s25 = sphi %s1898_s25, %s2300_s25   ;;  %s1837_s24 = sphi %s1896_s24, %s2299_s24  }
   0xa   : > { %p1238_p0 = scmp.ge.s32.totalorder %s1849_s27, 1  ;;  %p46_p1 = scmp.eq.s32.totalorder %s1920_s8, 0 }
   0xb   : > { %p208_p2 = scmp.lt.s32.totalorder %s1849_s27, 3  ;;  %s1851_s10 = smov [#allocation8]  }
   0xc   : > { %s221_s11 = sshll.u32 %s1851_s10, 4  ;;  %s236_s14 = sshll.u32 %s2279_s3, 4  ;;  %s222_s11 = int_to_ptr.vmem [resolvable:$true] %s221_s11  ;;  %s237_s14 = int_to_ptr.hbm [resolvable:$true] %s236_s14 }
   0xd   : > { %p1925_p3 = pnand %p1238_p0, %p208_p2  ;;  %s253_s18 = sshll.u32 %s2281_s5, 4  ;;  %s254_s18 = int_to_ptr.hbm [resolvable:$true] %s253_s18 }
   0xe   : > { %s1852_s19 = smov [#allocation10]   ;;  %s1853_s21 = smov 64  }
   0xf   : > { %s219_s30 = sshll.u32 %s2285_s1, 4  ;;  %p1590_p4 = pneg %p1925_p3  ;;  %s220_s30 = int_to_ptr.hbm [resolvable:$true] %s219_s30 }
  0x10   : > { %s238_s20 = sshll.u32 %s1852_s19, 4  ;;  %s1854_s22 = smov 4   ;;  %s239_s20 = int_to_ptr.vmem [resolvable:$true] %s238_s20 }
  0x11   : > { %p1937_p6 = pnand %p1590_p4, %p46_p1  ;;  %s1855_s23 = smov [#allocation11]  }
  0x12   : > { %s255_s28 = sshll.u32 %s1855_s23, 4  ;;  %s1237_s29 = sadd.s32 4294967294, %s1849_s27   ;;  %s256_s28 = int_to_ptr.vmem [resolvable:$true] %s255_s28 }
  0x13   : > { %1593 = dma.hbm_to_vmem [thread:$0]  (!%p1937_p6), %s220_s30, 3072, %s222_s11, [#allocation9], %s1853_s21, %s1853_s21, %s1854_s22  }
  0x14   : > { %1596 = dma.hbm_to_vmem [thread:$0]  (!%p1937_p6), %s237_s14, 3072, %s239_s20, [#allocation9], %s1853_s21, %s1853_s21, %s1854_s22  }
  0x15   : > { %1599 = dma.hbm_to_vmem [thread:$0]  (!%p1937_p6), %s254_s18, 1024, %s256_s28, [#allocation12], %s1853_s21, %s1853_s21, %s1854_s22  }
  0x16   : > { %s1952_s10 = sadd.s32 1, %s1849_s27   ;;  %s32_s12 = sadd.s32 1, %s1845_s26 }
  0x17   : > { %s29_s30 = ssub.s32 %s1849_s27, %s1952_s10  ;;  %p39_p7 = scmp.ne.s32.totalorder %s1845_s26, %s1841_s25 }
  0x18   : > { %p30_p8 = scmp.eq.s32.totalorder %s29_s30, 0  ;;  %p40_p9 = scmp.eq.s32.totalorder %s1849_s27, 0 }
  0x19   : > { %p45_p10 = scmp.ne.s32.totalorder %s1841_s25, %s1837_s24  ;;  %p195_p11 = scmp.eq.s32.totalorder %s1920_s8, 1 }
  0x1a   : > { %s1964_s11 = scalar_select %p30_p8, %s1845_s26, %s32_s12  }
  0x1b   : > { %p1968_p12 = por %p46_p1, %p45_p10  ;;  %p1972_p13 = por %p195_p11, %p39_p7 }
  0x1c   : > { %p201_p0 = scmp.eq.s32.totalorder %s1237_s29, 1  ;;  %p41_p2 = por %p40_p9, %p39_p7 }
  0x1d   : > { %s272_s15 = sand.u32 1, %s1845_s26   ;;  %p1611_p6 = scmp.lt.s32.totalorder %s1849_s27, 2 }
  0x1e   : > { %p1977_p4 = por %p201_p0, %p45_p10  ;;  %s1243_s17 = sshll.u32 %s272_s15, 3 }
  0x1f   : > { %s1244_s18 = sshll.u32 %s1849_s27, 3  ;;  %s276_s23 = scalar_lea.vmem [#allocation5], %s1243_s17 }
  0x20   : > { %s280_s21 = scalar_lea.hbm %s2276_s0, %s1244_s18  ;;  %s284_s28 = sshll.u32 %s276_s23, 4  ;;  %s285_s28 = int_to_ptr.vmem [resolvable:$true] %s284_s28 }
  0x21   : > { %s282_s22 = sshll.u32 %s280_s21, 4  ;;  %p1986_p8 = pnand %p1611_p6, %p41_p2  ;;  %s283_s22 = int_to_ptr.hbm [resolvable:$true] %s282_s22 }
  0x22   : > { %s273_s12 = scalar_lea.sflag [#allocation6], %s272_s15  ;;  %s1745_s30 = sshra.s32 %s283_s22, 4  ;;  %s1746_s30 = int_to_ptr.hbm [resolvable:$true] %s1745_s30 }
  0x23   : > { %s1747_s1 = scalar_lea.hbm %s1746_s30, 8  ;;  %p1749_p9 = pneg %p1986_p8 }
  0x24   : > { %p1748_p7 = scmp.ne.s32.totalorder %s1746_s30, %s1747_s1  ;;  %s1752_s17 = scalar_lea.hbm %s2276_s0, 16 }
  0x25   : > { %p1753_p0 = scmp.lt.s32.totalorder %s1746_s30, %s2276_s0  ;;  %p1754_p2 = scmp.lt.s32.totalorder %s1752_s17, %s1747_s1 }
  0x26   : > { %p1750_p10 = pnand %p1749_p9, %p1748_p7 }
  0x27   : > { %p1755_p6 = por %p1754_p2, %p1753_p0 }
  0x28   : > { %p1751_p11 = pneg %p1750_p10 }
  0x2a   : > { %p1756_p5 = pnand %p1755_p6, %p1751_p11 }
  0x2c   : > { %1759 = shalt.err (!%p1756_p5)
}
  0x2d   : > { %1603 = dma.hbm_to_vmem [thread:$0]  (!%p1986_p8), %s283_s22, 128, %s285_s28, %s273_s12  }
  0x2e   : > { %293 = sbr.rel (%p1925_p3) target bundleno = 1258 (0x4ea), region = 48  ;;  %s2003_s15 = sand.u32 (!%p1925_p3), 1, %s1841_s25  }
  0x2f   : > { %s1246_s23 = sshll.u32 (!%p1925_p3), %s2003_s15, 3  ;;  %s296_s18 = scalar_lea.sflag (!%p1925_p3), [#allocation6], %s2003_s15 }
  0x30   : > { %s2007_s19 = scalar_lea.vmem (!%p1925_p3), [#allocation5], %s1246_s23 }
  0x33   : > { %1820 = dma.done.wait (%p1968_p12), %s296_s18, 128  }
  0x34   : > { %1822 = vsyncadd (%p1968_p12), %s296_s18, 4294967168 }
  0x35   : > { %1824 = dma.done.wait (%p46_p1), [#allocation9], 6144  }
  0x36   : > { %1826 = vsyncadd (%p46_p1), [#allocation9], 4294961152 }
  0x37   : > { %1828 = dma.done.wait (%p46_p1), [#allocation12], 1024  }
  0x38   : > { %1830 = vsyncadd (%p46_p1), [#allocation12], 4294966272  ;;  %v1531_v0 = vld [vmem:[#allocation8 + $0x78] sm:$0xff]  ;;  %v1530_v3 = vld [vmem:[#allocation8 + $0x70] sm:$0xff]  ;;  %v650_v63 = vlaneseq  ;;  %s1138_s17 = scalar_lea.hbm %s2283_s7, %s1920_s8  ;;  %s344_s23 = scalar_lea.vmem [#allocation13], %s2003_s15 }
  0x39   : > { %v1523_v1 = vld [vmem:[#allocation8 + $0x38] sm:$0xff]  ;;  %505 = vmatpush.bf16.msra.mxu0 %v1531_v0  ;;  %v1522_v4 = vld [vmem:[#allocation8 + $0x30] sm:$0xff]  ;;  %v1529_v6 = vld [vmem:[#allocation8 + $0x68] sm:$0xff]  ;;  %s1140_s18 = sshll.u32 %s344_s23, 4  ;;  %s1130_s1 = scalar_lea.sflag [#allocation7], %s2003_s15  ;;  %s1141_s18 = int_to_ptr.vmem [resolvable:$true] %s1140_s18 }
  0x3a   : > { %v1539_v2 = vld [vmem:[#allocation8 + $0xb8] sm:$0xff]  ;;  %566 = vmatpush.bf16.msra.mxu1 %v1523_v1  ;;  %v1538_v5 = vld [vmem:[#allocation8 + $0xb0] sm:$0xff]  ;;  %v1521_v7 = vld [vmem:[#allocation8 + $0x28] sm:$0xff]  ;;  %s1795_s28 = scalar_lea.hbm %s2283_s7, 2 }
  0x3b   : > { %630 = vmatpush.bf16.msra.mxu2 %v1539_v2  ;;  %v1537_v8 = vld [vmem:[#allocation8 + $0xa8] sm:$0xff]  ;;  %v2021_v9 = vld [vmem:[#allocation10 + $0x38] sm:$0xff]  ;;  %v1528_v10 = vld [vmem:[#allocation8 + $0x60] sm:$0xff]  ;;  %v2129_v2 = vshrl.u32 %v650_v63, 7 }
  0x3c   : > { %v1520_v11 = vld [vmem:[#allocation8 + $0x20] sm:$0xff]  ;;  %709 = vmatpush.bf16.msra.mxu3 %v2021_v9  ;;  %v2024_v13 = vld [vmem:[#allocation10 + $0x30] sm:$0xff]  ;;  %v1527_v14 = vld [vmem:[#allocation8 + $0x58] sm:$0xff] }
  0x3d   : > { %506 = vmatpush.bf16.msra.mxu0 %v1530_v3  ;;  %v1536_v12 = vld [vmem:[#allocation8 + $0xa0] sm:$0xff]  ;;  %v1519_v15 = vld [vmem:[#allocation8 + $0x18] sm:$0xff]  ;;  %v1526_v19 = vld [vmem:[#allocation8 + $0x50] sm:$0xff]  ;;  %vm1572_vm0 = vcmp.ne.s32.totalorder %v2129_v2, 0  ;;  %vm1573_vm1 = vcmp.ne.s32.totalorder %v2129_v2, 5  ;;  %vm906_vm4 = vcmp.eq.s32.totalorder %v2129_v2, 2 }
  0x3e   : > { %567 = vmatpush.bf16.msra.mxu1 %v1522_v4  ;;  %v447_v16 = vld [vmem:[%s2007_s19] sm:$0xff]  ;;  %v1525_v23 = vld [vmem:[#allocation8 + $0x48] sm:$0xff]  ;;  %v1524_v28 = vld [vmem:[#allocation8 + $0x40] sm:$0xff]  ;;  %s1142_s19 = sshll.u32 %s1138_s17, 4  ;;  %s1143_s19 = int_to_ptr.hbm [resolvable:$true] %s1142_s19 }
  0x3f   : > { %631 = vmatpush.bf16.msra.mxu2 %v1538_v5  ;;  %v1535_v17 = vld [vmem:[#allocation8 + $0x98] sm:$0xff]  ;;  %v448_v18 = vpack.c.bf16 %v447_v16, %v447_v16  ;;  %v1518_v20 = vld [vmem:[#allocation8 + $0x10] sm:$0xff]  ;;  %v1517_v24 = vld [vmem:[#allocation8 + $0x8] sm:$0xff]  ;;  %s1789_s9 = sshra.s32 %s1143_s19, 4  ;;  %s1790_s9 = int_to_ptr.hbm [resolvable:$true] %s1789_s9 }
  0x40   : > { %710 = vmatpush.bf16.msra.mxu3 %v2024_v13  ;;  %v1534_v21 = vld [vmem:[#allocation8 + $0x90] sm:$0xff]  ;;  %v1533_v25 = vld [vmem:[#allocation8 + $0x88] sm:$0xff]  ;;  %v1516_v29 = vld [vmem:[#allocation8] sm:$0xff]  ;;  %s1791_s13 = scalar_lea.hbm %s1790_s9, 1  ;;  %p1796_p12 = scmp.lt.s32.totalorder %s1790_s9, %s2283_s7 }
  0x41   : > { %507 = vmatpush.bf16.msra.mxu0 %v1529_v6  ;;  %v452_v22 = vshll.u32 %v448_v18, 16  ;;  %v450_v26 = vshrl.u32 %v448_v18, 16  ;;  %v1532_v30 = vld [vmem:[#allocation8 + $0x80] sm:$0xff]  ;;  %v2028_v31 = vld [vmem:[#allocation10 + $0x78] sm:$0xff]  ;;  %v580_v34 = vrot.slane %v448_v18, 1  ;;  %v2033_v35 = vld [vmem:[#allocation10 + $0x70] sm:$0xff]  ;;  %p1792_p1 = scmp.ne.s32.totalorder %s1790_s9, %s1791_s13  ;;  %p1797_p8 = scmp.lt.s32.totalorder %s1795_s28, %s1791_s13 }
  0x42   : > { %568 = vmatpush.bf16.msra.mxu1 %v1521_v7  ;;  %v2030_v32 = vld [vmem:[#allocation10 + $0xb8] sm:$0xff]  ;;  %v2036_v36 = vld [vmem:[#allocation10 + $0xb0] sm:$0xff]  ;;  %v2042_v37 = vld [vmem:[#allocation10 + $0x28] sm:$0xff] }
  0x43   : > { %632 = vmatpush.bf16.msra.mxu2 %v1537_v8  ;;  %v454_v27 = vrot.slane %v452_v22, 1  ;;  %v2044_v38 = vld [vmem:[#allocation10 + $0x68] sm:$0xff]  ;;  %v2050_v40 = vld [vmem:[#allocation10 + $0x20] sm:$0xff]  ;;  %v2062_v43 = vld [vmem:[#allocation10 + $0x18] sm:$0xff]  ;;  %p1793_p3 = pnand %p1792_p1, %p1972_p13  ;;  %p1798_p7 = por %p1797_p8, %p1796_p12 }
  0x44   : > { %v2046_v39 = vld [vmem:[#allocation10 + $0xa8] sm:$0xff]  ;;  %711 = vmatpush.bf16.msra.mxu3 %v2042_v37  ;;  %v2052_v41 = vld [vmem:[#allocation10 + $0x60] sm:$0xff]  ;;  %v2064_v44 = vld [vmem:[#allocation10 + $0x58] sm:$0xff] }
  0x45   : > { %508 = vmatpush.bf16.msra.mxu0 %v1528_v10  ;;  %v455_v33 = vor.u32 %v454_v27, %v450_v26  ;;  %v2055_v42 = vld [vmem:[#allocation10 + $0xa0] sm:$0xff]  ;;  %v2066_v45 = vld [vmem:[#allocation10 + $0x98] sm:$0xff]  ;;  %v2072_v46 = vld [vmem:[#allocation10 + $0x10] sm:$0xff]  ;;  %p1794_p5 = pneg %p1793_p3 }
  0x46   : > { %569 = vmatpush.bf16.msra.mxu1 %v1520_v11  ;;  %v2074_v47 = vld [vmem:[#allocation10 + $0x50] sm:$0xff]  ;;  %v2082_v49 = vld [vmem:[#allocation10 + $0x8] sm:$0xff]  ;;  %v2090_v52 = vld [vmem:[#allocation10] sm:$0xff] }
  0x47   : > { %633 = vmatpush.bf16.msra.mxu2 %v1536_v12  ;;  %v2076_v48 = vld [vmem:[#allocation10 + $0x90] sm:$0xff]  ;;  %v2084_v50 = vld [vmem:[#allocation10 + $0x48] sm:$0xff]  ;;  %v2092_v53 = vld [vmem:[#allocation10 + $0x40] sm:$0xff]  ;;  %p1799_p9 = pnand %p1798_p7, %p1794_p5 }
  0x48   : > { %712 = vmatpush.bf16.msra.mxu3 %v2050_v40  ;;  %v2086_v51 = vld [vmem:[#allocation10 + $0x88] sm:$0xff]  ;;  %v2095_v54 = vld [vmem:[#allocation10 + $0x80] sm:$0xff]  ;;  %vm2139_vm2 = vmpackc.low %vm1572_vm0, %vm1572_vm0 }
  0x49   : > { %509 = vmatpush.bf16.msra.mxu0 %v1527_v14  ;;  %v1653_v58 = vld [vmem:[%s2278_s2] ss:$0 sm:$0xff]  ;;  %vm2145_vm3 = vmpackc.low %vm1573_vm1, %vm1573_vm1 }
  0x4a   : > { %570 = vmatpush.bf16.msra.mxu1 %v1519_v15  ;;  %v2180_v16 = vld [vmem:[%s2280_s4] ss:$0 sm:$0xff]  ;;  %vm2213_vm5 = vmneg %vm906_vm4 }
  0x4b   : > { %634 = vmatpush.bf16.msra.mxu2 %v1535_v17  ;;  %vm1469_vm6 = vmpackc.low %vm2213_vm5, %vm2213_vm5 }
  0x4c   : > { %713 = vmatpush.bf16.msra.mxu3 %v2062_v43 }
  0x4d   : > { %510 = vmatpush.bf16.msra.mxu0 %v1526_v19 }
  0x4e   : > { %571 = vmatpush.bf16.msra.mxu1 %v1518_v20 }
  0x4f   : > { %635 = vmatpush.bf16.msra.mxu2 %v1534_v21 }
  0x50   : > { %714 = vmatpush.bf16.msra.mxu3 %v2072_v46 }
  0x51   : > { %511 = vmatpush.bf16.msra.mxu0 %v1525_v23 }
  0x52   : > { %572 = vmatpush.bf16.msra.mxu1 %v1517_v24 }
  0x53   : > { %636 = vmatpush.bf16.msra.mxu2 %v1533_v25 }
  0x54   : > { %715 = vmatpush.bf16.msra.mxu3 %v2082_v49 }
  0x55   : > { %512 = vmatpush.bf16.msra.mxu0 %v1524_v28 }
  0x56   : > { %573 = vmatpush.bf16.msra.mxu1 %v1516_v29 }
  0x57   : > { %637 = vmatpush.bf16.msra.mxu2 %v1532_v30 }
  0x58   : > { %513 = vmatmul.bf16.vlgmr.msra.gmra.mxu0 %v455_v33  ;;  %716 = vmatpush.bf16.msra.mxu3 %v2090_v52 }
  0x59   : > { %770 = vmatpush.bf16.msrb.mxu0 %v2028_v31  ;;  %574 = vmatmul.bf16.vlgmr.msra.gmra.mxu1 %v448_v18 }
  0x5a   : > { %832 = vmatpush.bf16.msrb.mxu1 %v2030_v32  ;;  %638 = vmatmul.bf16.vlgmr.msra.gmra.mxu2 %v580_v34 }
  0x5b   : > { %858 = vmatpush.bf16.msrb.mxu2 %v2021_v9 }
  0x5c   : > { %871 = vmatpush.bf16.msrb.mxu3 %v2028_v31 }
  0x5d   : > { %771 = vmatpush.bf16.msrb.mxu0 %v2033_v35 }
  0x5e   : > { %833 = vmatpush.bf16.msrb.mxu1 %v2036_v36 }
  0x5f   : > { %859 = vmatpush.bf16.msrb.mxu2 %v2024_v13 }
  0x60   : > { %872 = vmatpush.bf16.msrb.mxu3 %v2033_v35 }
  0x61   : > { %772 = vmatpush.bf16.msrb.mxu0 %v2044_v38 }
  0x62   : > { %834 = vmatpush.bf16.msrb.mxu1 %v2046_v39 }
  0x63   : > { %860 = vmatpush.bf16.msrb.mxu2 %v2042_v37 }
  0x64   : > { %873 = vmatpush.bf16.msrb.mxu3 %v2044_v38 }
  0x65   : > { %773 = vmatpush.bf16.msrb.mxu0 %v2052_v41 }
  0x66   : > { %835 = vmatpush.bf16.msrb.mxu1 %v2055_v42 }
  0x67   : > { %861 = vmatpush.bf16.msrb.mxu2 %v2050_v40 }
  0x68   : > { %874 = vmatpush.bf16.msrb.mxu3 %v2052_v41 }
  0x69   : > { %774 = vmatpush.bf16.msrb.mxu0 %v2064_v44 }
  0x6a   : > { %836 = vmatpush.bf16.msrb.mxu1 %v2066_v45 }
  0x6b   : > { %862 = vmatpush.bf16.msrb.mxu2 %v2062_v43 }
  0x6c   : > { %875 = vmatpush.bf16.msrb.mxu3 %v2064_v44 }
  0x6d   : > { %775 = vmatpush.bf16.msrb.mxu0 %v2074_v47 }
  0x6e   : > { %837 = vmatpush.bf16.msrb.mxu1 %v2076_v48 }
  0x6f   : > { %863 = vmatpush.bf16.msrb.mxu2 %v2072_v46 }
  0x70   : > { %876 = vmatpush.bf16.msrb.mxu3 %v2074_v47 }
  0x71   : > { %776 = vmatpush.bf16.msrb.mxu0 %v2084_v50 }
  0x72   : > { %838 = vmatpush.bf16.msrb.mxu1 %v2086_v51 }
  0x73   : > { %864 = vmatpush.bf16.msrb.mxu2 %v2082_v49 }
  0x74   : > { %877 = vmatpush.bf16.msrb.mxu3 %v2084_v50 }
  0x75   : > { %777 = vmatpush.bf16.msrb.mxu0 %v2092_v53 }
  0x76   : > { %839 = vmatpush.bf16.msrb.mxu1 %v2095_v54 }
  0x77   : > { %865 = vmatpush.bf16.msrb.mxu2 %v2090_v52 }
  0x78   : > { %878 = vmatpush.bf16.msrb.mxu3 %v2092_v53 }
  0x79   : > { %885 = vmatpush.bf16.msra.mxu0 %v2030_v32 }
  0x7a   : > { %918 = vmatpush.bf16.msra.mxu1 %v2021_v9 }
  0x7b   : > { %931 = vmatpush.bf16.msra.mxu2 %v2028_v31 }
  0x7d   : > { %886 = vmatpush.bf16.msra.mxu0 %v2036_v36 }
  0x7e   : > { %919 = vmatpush.bf16.msra.mxu1 %v2024_v13 }
  0x7f   : > { %932 = vmatpush.bf16.msra.mxu2 %v2033_v35 }
  0x81   : > { %887 = vmatpush.bf16.msra.mxu0 %v2046_v39 }
  0x82   : > { %920 = vmatpush.bf16.msra.mxu1 %v2042_v37 }
  0x83   : > { %933 = vmatpush.bf16.msra.mxu2 %v2044_v38 }
  0x85   : > { %888 = vmatpush.bf16.msra.mxu0 %v2055_v42 }
  0x86   : > { %921 = vmatpush.bf16.msra.mxu1 %v2050_v40 }
  0x87   : > { %934 = vmatpush.bf16.msra.mxu2 %v2052_v41 }
  0x89   : > { %889 = vmatpush.bf16.msra.mxu0 %v2066_v45 }
  0x8a   : > { %922 = vmatpush.bf16.msra.mxu1 %v2062_v43 }
  0x8b   : > { %935 = vmatpush.bf16.msra.mxu2 %v2064_v44 }
  0x8d   : > { %890 = vmatpush.bf16.msra.mxu0 %v2076_v48 }
  0x8e   : > { %923 = vmatpush.bf16.msra.mxu1 %v2072_v46 }
  0x8f   : > { %936 = vmatpush.bf16.msra.mxu2 %v2074_v47 }
  0x91   : > { %891 = vmatpush.bf16.msra.mxu0 %v2086_v51 }
  0x92   : > { %924 = vmatpush.bf16.msra.mxu1 %v2082_v49 }
  0x93   : > { %937 = vmatpush.bf16.msra.mxu2 %v2084_v50 }
  0x95   : > { %892 = vmatpush.bf16.msra.mxu0 %v2095_v54 }
  0x96   : > { %925 = vmatpush.bf16.msra.mxu1 %v2090_v52 }
  0x97   : > { %938 = vmatpush.bf16.msra.mxu2 %v2092_v53 }
  0xd5   : > { %v514_v55 = vpop.f32.mrf.mxu0 }
  0xd6   : > { %v575_v56 = vpop.f32.mrf.mxu1 }
  0xd7   : > { %v576_v57 = vadd.f32 %v575_v56, %v514_v55 }
  0xdd   : > { %v639_v59 = vpop.f32.mrf.mxu2  ;;  %v516_v61 = vpop.f32.mrf.mxu0 }
  0xde   : > { %v643_v60 = vadd.f32 %v639_v59, %v576_v57  ;;  %v577_v62 = vpop.f32.mrf.mxu1 }
  0xe0   : > { %v647_v0 = vadd.f32 %v1653_v58, %v643_v60 }
  0xe2   : > { %v648_v1 = vmax.f32 %v647_v0, 0.0 }
  0xe4   : > { %649 = vst [vmem:[#allocation2 + $0x1] sm:$0x3f] %v648_v1 }
  0xe5   : > { %v641_v3 = vpop.f32.mrf.mxu2 }
  0xeb   : > { %v656_v5 = vld [vmem:[#allocation2] sm:$0x3f] }
  0xec   : > { %v654_v6 = vld [vmem:[#allocation2 + $0x1] sm:$0x3f]  ;;  %v1381_v8 = vpack.c.bf16 %v656_v5, %v656_v5 }
  0xed   : > { %v658_v7 = vld [vmem:[#allocation2 + $0x2] sm:$0x3f]  ;;  %v655_v10 = vpack.c.bf16 %v654_v6, %v654_v6 }
  0xee   : > { %v1450_v12 = vpack.c.bf16 %v658_v7, %v658_v7  ;;  %1382 = vmatmul.msk.bf16.vlgmr.msra.gmra.mxu3 %vm2139_vm2, %v1381_v8 }
  0xef   : > { %778 = vmatmul.bf16.vlgmr.msrb.gmra.mxu0 %v655_v10  ;;  %945 = vmatpush.bf16.msra.mxu3 %v2030_v32 }
  0xf0   : > { %1451 = vmatmul.msk.bf16.vlgmr.msrb.gmra.mxu1 %vm2145_vm3, %v1450_v12  ;;  %968 = vmatpush.bf16.msrb.mxu0 %v2021_v9 }
  0xf1   : > { %981 = vmatpush.bf16.msrb.mxu1 %v2028_v31 }
  0xf3   : > { %946 = vmatpush.bf16.msra.mxu3 %v2036_v36 }
  0xf4   : > { %969 = vmatpush.bf16.msrb.mxu0 %v2024_v13 }
  0xf5   : > { %982 = vmatpush.bf16.msrb.mxu1 %v2033_v35 }
  0xf7   : > { %947 = vmatpush.bf16.msra.mxu3 %v2046_v39 }
  0xf8   : > { %970 = vmatpush.bf16.msrb.mxu0 %v2042_v37 }
  0xf9   : > { %983 = vmatpush.bf16.msrb.mxu1 %v2044_v38 }
  0xfb   : > { %948 = vmatpush.bf16.msra.mxu3 %v2055_v42 }
  0xfc   : > { %971 = vmatpush.bf16.msrb.mxu0 %v2050_v40 }
  0xfd   : > { %984 = vmatpush.bf16.msrb.mxu1 %v2052_v41 }
  0xff   : > { %949 = vmatpush.bf16.msra.mxu3 %v2066_v45 }
 0x100   : > { %972 = vmatpush.bf16.msrb.mxu0 %v2062_v43 }
 0x101   : > { %985 = vmatpush.bf16.msrb.mxu1 %v2064_v44 }
 0x103   : > { %950 = vmatpush.bf16.msra.mxu3 %v2076_v48 }
 0x104   : > { %973 = vmatpush.bf16.msrb.mxu0 %v2072_v46 }
 0x105   : > { %986 = vmatpush.bf16.msrb.mxu1 %v2074_v47 }
 0x107   : > { %951 = vmatpush.bf16.msra.mxu3 %v2086_v51 }
 0x108   : > { %974 = vmatpush.bf16.msrb.mxu0 %v2082_v49 }
 0x109   : > { %987 = vmatpush.bf16.msrb.mxu1 %v2084_v50 }
 0x10b   : > { %952 = vmatpush.bf16.msra.mxu3 %v2095_v54 }
 0x10c   : > { %975 = vmatpush.bf16.msrb.mxu0 %v2090_v52 }
 0x10d   : > { %988 = vmatpush.bf16.msrb.mxu1 %v2092_v53 }
 0x16c   : > { %v779_v9 = vpop.f32.mrf.mxu0 }
 0x16d   : > { %v841_v13 = vpop.f32.mrf.mxu1 }
 0x171   : > { %v718_v14 = vpop.f32.mrf.mxu3 }
 0x172   : > { %v780_v15 = vadd.f32 %v779_v9, %v718_v14 }
 0x174   : > { %v781_v17 = vpop.f32.mrf.mxu0  ;;  %v845_v18 = vadd.f32 %v841_v13, %v780_v15 }
 0x175   : > { %v843_v19 = vpop.f32.mrf.mxu1 }
 0x176   : > { %v849_v20 = vadd.f32 %v2180_v16, %v845_v18  ;;  %v1571_v19 = vld [vmem:[#allocation11 + $0x38] sm:$0xff] }
 0x178   : > { %v850_v21 = vmax.f32 %v849_v20, 0.0  ;;  %v1570_v20 = vld [vmem:[#allocation11 + $0x30] sm:$0xff] }
 0x179   : > { %v720_v22 = vpop.f32.mrf.mxu3 }
 0x17a   : > { %851 = vst [vmem:[#allocation2 + $0x1] sm:$0x3f] %v850_v21  ;;  %v852_v23 = vpack.c.bf16 %v850_v21, %v850_v21  ;;  %v1569_v21 = vld [vmem:[#allocation11 + $0x28] sm:$0xff]  ;;  %v1568_v22 = vld [vmem:[#allocation11 + $0x20] sm:$0xff] }
 0x17c   : > { %879 = vmatmul.bf16.vlgmr.msrb.gmra.mxu3 %v852_v23  ;;  %v1566_v23 = vld [vmem:[#allocation11 + $0x10] sm:$0xff] }
 0x17d   : > { %1020 = vmatpush.bf16.msrb.mxu3 %v2028_v31 }
 0x181   : > { %v853_v24 = vld [vmem:[#allocation2] sm:$0x3f]  ;;  %1021 = vmatpush.bf16.msrb.mxu3 %v2033_v35 }
 0x182   : > { %v855_v25 = vld [vmem:[#allocation2 + $0x2] sm:$0x3f]  ;;  %v1455_v26 = vpack.c.bf16 %v853_v24, %v853_v24  ;;  %v446_v24 = vld [vmem:[%s2280_s4] sm:$0x1] }
 0x183   : > { %v1460_v27 = vpack.c.bf16 %v855_v25, %v855_v25 }
 0x184   : > { %1456 = vmatmul.msk.bf16.vlgmr.msrb.gmra.mxu2 %vm2139_vm2, %v1455_v26 }
 0x185   : > { %1461 = vmatmul.msk.bf16.vlgmr.msra.gmra.mxu0 %vm2145_vm3, %v1460_v27  ;;  %995 = vmatpush.bf16.msrb.mxu2 %v2030_v32 }
 0x186   : > { %1022 = vmatpush.bf16.msrb.mxu3 %v2044_v38  ;;  %1035 = vmatpush.bf16.msra.mxu0 %v2028_v31 }
 0x189   : > { %996 = vmatpush.bf16.msrb.mxu2 %v2036_v36 }
 0x18a   : > { %1023 = vmatpush.bf16.msrb.mxu3 %v2052_v41  ;;  %1036 = vmatpush.bf16.msra.mxu0 %v2033_v35 }
 0x18d   : > { %997 = vmatpush.bf16.msrb.mxu2 %v2046_v39 }
 0x18e   : > { %1024 = vmatpush.bf16.msrb.mxu3 %v2064_v44  ;;  %1037 = vmatpush.bf16.msra.mxu0 %v2044_v38 }
 0x191   : > { %998 = vmatpush.bf16.msrb.mxu2 %v2055_v42 }
 0x192   : > { %1025 = vmatpush.bf16.msrb.mxu3 %v2074_v47  ;;  %1038 = vmatpush.bf16.msra.mxu0 %v2052_v41 }
 0x195   : > { %999 = vmatpush.bf16.msrb.mxu2 %v2066_v45 }
 0x196   : > { %1026 = vmatpush.bf16.msrb.mxu3 %v2084_v50  ;;  %1039 = vmatpush.bf16.msra.mxu0 %v2064_v44 }
 0x199   : > { %1000 = vmatpush.bf16.msrb.mxu2 %v2076_v48 }
 0x19a   : > { %1027 = vmatpush.bf16.msrb.mxu3 %v2092_v53  ;;  %1040 = vmatpush.bf16.msra.mxu0 %v2074_v47 }
 0x19d   : > { %1001 = vmatpush.bf16.msrb.mxu2 %v2086_v51 }
 0x19e   : > { %1041 = vmatpush.bf16.msra.mxu0 %v2084_v50 }
 0x1a1   : > { %1002 = vmatpush.bf16.msrb.mxu2 %v2095_v54 }
 0x1a2   : > { %1042 = vmatpush.bf16.msra.mxu0 %v2092_v53 }
 0x1ff   : > { %v880_v28 = vpop.f32.mrf.mxu3 }
 0x202   : > { %v894_v29 = vpop.f32.mrf.mxu0 }
 0x207   : > { %v867_v30 = vpop.f32.mrf.mxu2  ;;  %v882_v31 = vpop.f32.mrf.mxu3 }
 0x208   : > { %v881_v32 = vadd.f32 %v880_v28, %v867_v30  ;;  %v1565_v30 = vld [vmem:[#allocation11 + $0x8] sm:$0xff]  ;;  %v1564_v31 = vld [vmem:[#allocation11] sm:$0xff] }
 0x20a   : > { %v896_v33 = vpop.f32.mrf.mxu0  ;;  %v898_v34 = vadd.f32 %v894_v29, %v881_v32 }
 0x20c   : > { %v899_v35 = vadd.f32 %v2180_v16, %v898_v34 }
 0x20e   : > { %900 = vst [vmem:[#allocation3] sm:$0x3f] %v899_v35 }
 0x20f   : > { %v869_v36 = vpop.f32.mrf.mxu2 }
 0x215   : > { %v901_v37 = vld [vmem:[#allocation3] ss:$2 sm:$0x7]  ;;  %v903_v38 = vld [vmem:[#allocation3 + $0x1] ss:$2 sm:$0x7] }
 0x216   : > { %v905_v39 = vld [vmem:[#allocation3 + $0x2] ss:$2 sm:$0x7]  ;;  %v908_v40 = vmax.f32 %v901_v37, %v903_v38  ;;  %v1066_v37 = vld [vmem:[%s2282_s6] sm:$0x1] }
 0x217   : > { %v907_v41 = vsel %vm906_vm4, 0.0, %v905_v39 }
 0x218   : > { %v909_v42 = vmax.f32 %v908_v40, %v907_v41 }
 0x21a   : > { %v910_v43 = vmax.f32 %v909_v42, 0.0 }
 0x21c   : > { %911 = vst [vmem:[#allocation2 + $0x1] sm:$0x7] %v910_v43  ;;  %v912_v44 = vpack.c.bf16 %v910_v43, %v910_v43 }
 0x21e   : > { %939 = vmatmul.bf16.vlgmr.msra.gmra.mxu2 %v912_v44 }
 0x223   : > { %v913_v46 = vld [vmem:[#allocation2] sm:$0x7] }
 0x224   : > { %v915_v47 = vld [vmem:[#allocation2 + $0x2] sm:$0x7]  ;;  %v1465_v48 = vpack.c.bf16 %v913_v46, %v913_v46 }
 0x225   : > { %v1470_v49 = vpack.c.bf16 %v915_v47, %v915_v47 }
 0x226   : > { %1466 = vmatmul.msk.bf16.vlgmr.msra.gmra.mxu1 %vm2139_vm2, %v1465_v48 }
 0x227   : > { %1471 = vmatmul.msk.bf16.vlgmr.msra.gmra.mxu3 %vm1469_vm6, %v1470_v49  ;;  %1115 = vmatpush.bf16.msra.mxu1 %v1571_v19 }
 0x22b   : > { %1116 = vmatpush.bf16.msra.mxu1 %v1570_v20 }
 0x22f   : > { %1117 = vmatpush.bf16.msra.mxu1 %v1569_v21 }
 0x233   : > { %1118 = vmatpush.bf16.msra.mxu1 %v1568_v22 }
 0x2a1   : > { %v940_v50 = vpop.f32.mrf.mxu2 }
 0x2a3   : > { %v927_v51 = vpop.f32.mrf.mxu1 }
 0x2a4   : > { %v941_v52 = vadd.f32 %v940_v50, %v927_v51 }
 0x2a9   : > { %v942_v53 = vpop.f32.mrf.mxu2 }
 0x2aa   : > { %v954_v54 = vpop.f32.mrf.mxu3 }
 0x2ab   : > { %v958_v55 = vadd.f32 %v954_v54, %v941_v52  ;;  %v929_v56 = vpop.f32.mrf.mxu1 }
 0x2ad   : > { %v959_v57 = vadd.f32 %v2180_v16, %v958_v55 }
 0x2af   : > { %v960_v58 = vmax.f32 %v959_v57, 0.0 }
 0x2b1   : > { %v962_v59 = vpack.c.bf16 %v960_v58, %v960_v58  ;;  %961 = vst [vmem:[#allocation2 + $0x1] sm:$0x7] %v960_v58 }
 0x2b2   : > { %v956_v60 = vpop.f32.mrf.mxu3 }
 0x2b3   : > { %989 = vmatmul.bf16.vlgmr.msrb.gmra.mxu1 %v962_v59 }
 0x2b8   : > { %v963_v61 = vld [vmem:[#allocation2] sm:$0x7] }
 0x2b9   : > { %v965_v62 = vld [vmem:[#allocation2 + $0x2] sm:$0x7]  ;;  %v1475_v63 = vpack.c.bf16 %v963_v61, %v963_v61 }
 0x2ba   : > { %v1480_v0 = vpack.c.bf16 %v965_v62, %v965_v62 }
 0x2bb   : > { %1476 = vmatmul.msk.bf16.vlgmr.msrb.gmra.mxu0 %vm2139_vm2, %v1475_v63 }
 0x2bc   : > { %1481 = vmatmul.msk.bf16.vlgmr.msrb.gmra.mxu2 %vm1469_vm6, %v1480_v0 }
 0x330   : > { %v990_v1 = vpop.f32.mrf.mxu1 }
 0x338   : > { %v977_v2 = vpop.f32.mrf.mxu0  ;;  %v992_v3 = vpop.f32.mrf.mxu1 }
 0x339   : > { %v991_v5 = vadd.f32 %v990_v1, %v977_v2 }
 0x33f   : > { %v1004_v6 = vpop.f32.mrf.mxu2 }
 0x340   : > { %v1008_v7 = vadd.f32 %v1004_v6, %v991_v5  ;;  %v979_v8 = vpop.f32.mrf.mxu0 }
 0x342   : > { %v1009_v10 = vadd.f32 %v2180_v16, %v1008_v7  ;;  %v1567_v16 = vld [vmem:[#allocation11 + $0x18] sm:$0xff] }
 0x343   : > { %1119 = vmatpush.bf16.msra.mxu1 %v1567_v16 }
 0x344   : > { %v1010_v11 = vadd.f32 %v1009_v10, %v909_v42 }
 0x346   : > { %1011 = vst [vmem:[#allocation3] sm:$0x7] %v1010_v11 }
 0x347   : > { %v1006_v12 = vpop.f32.mrf.mxu2  ;;  %1120 = vmatpush.bf16.msra.mxu1 %v1566_v23 }
 0x34b   : > { %1121 = vmatpush.bf16.msra.mxu1 %v1565_v30 }
 0x34d   : > { %v1012_v4 = vld [vmem:[#allocation3] ss:$2 sm:$0x1]  ;;  %v1013_v9 = vld [vmem:[#allocation3 + $0x1] ss:$2 sm:$0x1] }
 0x34e   : > { %v1016_v13 = vmax.f32 %v1012_v4, %v1013_v9  ;;  %v1015_v14 = vld [vmem:[#allocation3 + $0x2] ss:$2 sm:$0x1] }
 0x34f   : > { %1122 = vmatpush.bf16.msra.mxu1 %v1564_v31 }
 0x350   : > { %v1017_v15 = vmax.f32 %v1016_v13, %v1015_v14 }
 0x352   : > { %v1018_v17 = vmax.f32 %v1017_v15, 0.0 }
 0x354   : > { %v1019_v18 = vpack.c.bf16 %v1018_v17, %v1018_v17 }
 0x356   : > { %1028 = vmatmul.bf16.vlgmr.msrb.gmra.mxu3 %v1019_v18 }
 0x3d9   : > { %v1029_v25 = vpop.f32.mrf.mxu3 }
 0x3da   : > { %v1030_v26 = vadd.f32 %v1029_v25, %v446_v24 }
 0x3dc   : > { %v1033_v27 = vmax.f32 %v1030_v26, 0.0 }
 0x3de   : > { %v1034_v28 = vpack.c.bf16 %v1033_v27, %v1033_v27 }
 0x3e0   : > { %1043 = vmatmul.bf16.vlgmr.msra.gmra.mxu0 %v1034_v28 }
 0x3e1   : > { %v1031_v29 = vpop.f32.mrf.mxu3 }
 0x45d   : > { %v1044_v32 = vpop.f32.mrf.mxu0 }
 0x45e   : > { %v1045_v33 = vadd.f32 %v1044_v32, %v446_v24 }
 0x460   : > { %v1048_v34 = vadd.f32 %v1045_v33, %v1017_v15 }
 0x462   : > { %v1049_v35 = vpack.c.bf16 %v1048_v34, %v1048_v34 }
 0x464   : > { %1123 = vmatmul.bf16.vlgmr.msra.gmra.mxu1 %v1049_v35 }
 0x465   : > { %v1046_v36 = vpop.f32.mrf.mxu0 }
 0x4e1   : > { %v1124_v38 = vpop.f32.mrf.mxu1 }
 0x4e2   : > { %v1125_v39 = vadd.f32 %v1124_v38, %v1066_v37 }
 0x4e4   : > { %1128 = vst [vmem:[%s344_s23] sm:$0x1] %v1125_v39 }
 0x4e5   : > { %1802 = shalt.err (!%p1799_p9)
}
 0x4e6   : > { %1588 = dma.vmem_to_hbm [thread:$0]  (%p1972_p13), %s1141_s18, 16, %s1143_s19, %s1130_s1  }
 0x4e9   : > { %v1126_v40 = vpop.f32.mrf.mxu1 }
 0x4ea PF: > { %s1154_s15 = sand.u32 1, %s1837_s24   ;;  %p2298_p10 = scmp.ge.s32.totalorder %s1849_s27, 2 }
 0x4eb   : > { %s1155_s30 = scalar_lea.sflag [#allocation7], %s1154_s15 }
 0x4ec   : > { %p1605_p11 = pnand %p2298_p10, %p1977_p4 }
 0x4ee   : > { %p1606_p0 = pneg %p1605_p11 }
 0x4f0   : > { %1832 = dma.done.wait (%p1606_p0), %s1155_s30, 16  }
 0x4f1   : > { %1834 = vsyncadd (%p1606_p0), %s1155_s30, 4294967280  ;;  %p22_p2 = scmp.ge.s32.totalorder %s1952_s10, 4   ;;  %s2299_s24 = smov %s1841_s25 }
 0x4f2   : > { %s2300_s25 = smov %s1845_s26  ;;  %s2301_s26 = smov %s1964_s11 }
 0x4f3   : > { %s2302_s27 = smov %s1952_s10  ;;  %24 = sbr.rel (!%p22_p2) target bundleno = 9 (0x9), region = 112 }
 0x4f8   :  { %1160 = vsyncpa [#allocation6], 1 }
 0x4f9   :  { %1162 = vsyncpa [#allocation6 + $0x1], 1 }
 0x4fa   :  { %1163 = vsyncpa [#allocation9], 1 }
 0x4fb   :  { %1164 = vsyncpa [#allocation12], 1 }
 0x4fc   :  { %1165 = vsyncpa [#allocation7], 1 }
 0x4fd   :  { %1167 = vsyncpa [#allocation7 + $0x1], 1 }

</bundles_post_ra>
